<compile_context>
chip_gen: v7x
topology: tpu7x:2x2x1
jax: 0.10.0
libtpu: 0.0.40
codegen_flags: <defaults>
</compile_context>

<pallas_src>
import jax
import jax.numpy as jnp
from jax.experimental import pallas as pl
from jax.experimental.pallas import tpu as pltpu

_LANE = 128
_BASE_BLOCK_BYTES = 2 * 1024 * 1024   # v5e / v6e
_V7X_BLOCK_BYTES = 4 * 1024 * 1024    # v7x: faster HBM -> larger blocks amortize step cost


def _sublane_multiple(itemsize: int) -> int:
    # Sublane packing: 8 rows for 4-byte, 16 for 2-byte, 32 for 1-byte dtypes.
    return {4: 8, 2: 16, 1: 32}.get(itemsize, 8)


def _device_info():
    """Return (vmem_capacity_bytes, is_v7x) with conservative fallbacks."""
    vmem_cap = 64 << 20  # smallest per-core VMEM across supported generations (v7x)
    try:
        vmem_cap = int(pltpu.get_tpu_info().vmem_capacity_bytes)
    except Exception:
        pass
    is_v7x = False
    try:
        is_v7x = "7" in jax.devices()[0].device_kind.lower()
    except Exception:
        pass
    return vmem_cap, is_v7x


def _choose_tiles(rows: int, dim: int, itemsize: int, target_bytes: int):
    sub = _sublane_multiple(itemsize)

    # Keep full-width rows (fully contiguous DMA slabs) unless even one sublane group of
    # full-width rows overflows the block budget; only then tile the lane dim in
    # 128-multiples that divide dim (so in-kernel gamma slices never go OOB).
    tile_cols = dim
    if dim % _LANE == 0 and dim * itemsize * sub > target_bytes:
        cap = max(_LANE, (target_bytes // (itemsize * sub)) // _LANE * _LANE)
        tile_cols = _LANE
        for cand in range(cap, _LANE - 1, -_LANE):
            if dim % cand == 0:
                tile_cols = cand
                break

    # Row tile: as many sublane-aligned rows as fit in the per-block byte budget.
    max_rows = max(sub, (target_bytes // max(1, tile_cols * itemsize)) // sub * sub)
    rows_ceil = -(-rows // sub) * sub
    tile_rows = max(sub, min(max_rows, rows_ceil))
    return tile_rows, tile_cols, sub


def layer_scale(x: jax.Array, gamma: jax.Array, *, target_block_bytes: int | None = None
                ) -> jax.Array:
    """Pallas implementation of LayerScale.forward: out = x * gamma.

    x: (..., dim), gamma: (dim,). Output dtype follows PyTorch promotion rules.
    """
    dim = x.shape[-1]
    assert gamma.shape == (dim,), f"gamma shape {gamma.shape} != ({dim},)"

    rows = 1
    for s in x.shape[:-1]:
        rows *= s
    out_dtype = jnp.result_type(x.dtype, gamma.dtype)  # matches torch type promotion
    if rows == 0:
        return jnp.zeros(x.shape, out_dtype)

    vmem_cap, is_v7x = _device_info()
    if target_block_bytes is None:
        target_block_bytes = _V7X_BLOCK_BYTES if is_v7x else _BASE_BLOCK_BYTES
    # Never let (2x in + 2x out) double-buffered blocks blow past physical VMEM.
    target_block_bytes = min(target_block_bytes, max(512 * 1024, vmem_cap // 6))

    x2d = x.reshape(rows, dim)
    g2d = gamma.reshape(1, dim)

    x_isz = jnp.dtype(x.dtype).itemsize
    g_isz = jnp.dtype(gamma.dtype).itemsize
    o_isz = jnp.dtype(out_dtype).itemsize
    isz = max(x_isz, o_isz)

    tile_rows, tile_cols, sub = _choose_tiles(rows, dim, isz, target_block_bytes)

    # v7x has 2 TensorCores per chip: make sure the "parallel" row axis has >= 2 tiles
    # so both cores get work (halve while keeping sublane alignment).
    if is_v7x:
        while pl.cdiv(rows, tile_rows) < 2 and tile_rows > sub:
            tile_rows = max(sub, -(-(tile_rows // 2) // sub) * sub)

    n_row = pl.cdiv(rows, tile_rows)
    n_col = pl.cdiv(dim, tile_cols)

    block_in = tile_rows * tile_cols * x_isz
    block_out = tile_rows * tile_cols * o_isz
    gamma_bytes = dim * g_isz
    # Generous slack (Mosaic internal scratch, partial-block padding), never tight,
    # clamped to physical VMEM.
    vmem_est = 2 * (block_in + block_out) + 2 * gamma_bytes + (4 << 20)
    vmem_limit = int(min(max(vmem_est, 32 << 20), vmem_cap))

    cost = pl.CostEstimate(
        flops=rows * dim,
        transcendentals=0,
        bytes_accessed=rows * dim * (x_isz + o_isz) + gamma_bytes,
    )

    if n_col == 1:
        # Common path: full-width rows, contiguous DMA, gamma resident across the grid.
        def kernel(x_ref, g_ref, o_ref):
            o_ref[...] = x_ref[...].astype(out_dtype) * g_ref[...].astype(out_dtype)

        grid = (n_row,)
        in_specs = [
            pl.BlockSpec((tile_rows, dim), lambda i: (i, 0)),
            pl.BlockSpec((1, dim), lambda i: (0, 0)),          # gamma: resident, fetched once
        ]
        out_specs = pl.BlockSpec((tile_rows, dim), lambda i: (i, 0))
        dim_sem = ("parallel",)
    else:
        # Very wide dim: lane-tile x/out, but keep gamma fully resident and slice in-kernel.
        def kernel(x_ref, g_ref, o_ref):
            start = pl.multiple_of(pl.program_id(1) * tile_cols, _LANE)
            g = g_ref[:, pl.ds(start, tile_cols)]
            o_ref[...] = x_ref[...].astype(out_dtype) * g.astype(out_dtype)

        grid = (n_row, n_col)
        in_specs = [
            pl.BlockSpec((tile_rows, tile_cols), lambda i, j: (i, j)),
            pl.BlockSpec((1, dim), lambda i, j: (0, 0)),        # gamma: fully resident
        ]
        out_specs = pl.BlockSpec((tile_rows, tile_cols), lambda i, j: (i, j))
        dim_sem = ("parallel", "parallel")

    out2d = pl.pallas_call(
        kernel,
        out_shape=jax.ShapeDtypeStruct((rows, dim), out_dtype),
        grid_spec=pltpu.PrefetchScalarGridSpec(
            num_scalar_prefetch=0,
            grid=grid,
            in_specs=in_specs,
            out_specs=out_specs,
        ),
        compiler_params=pltpu.CompilerParams(
            dimension_semantics=dim_sem,
            vmem_limit_bytes=vmem_limit,
        ),
        cost_estimate=cost,
    )(x2d, g2d)

    return out2d.reshape(x.shape)


if __name__ == "__main__":
    # Module params: LayerScale(dim, init_values=1e-5) -> gamma = init_values * ones(dim)
    dim = 128
    init_values = 1e-5
    gamma = init_values * jnp.ones((dim,), dtype=jnp.float32)

    # Transformer-style token stream: (batch, seq, dim)
    key = jax.random.PRNGKey(0)
    x = jax.random.normal(key, (2, 8, dim), dtype=jnp.float32)

    out = jax.block_until_ready(layer_scale(x, gamma))
    ref = x * gamma
    assert out.shape == x.shape and out.dtype == jnp.float32
    assert jnp.allclose(out, ref, rtol=1e-6, atol=1e-6)

    # Ragged row count (rows = 15, not a multiple of the row tile) exercises the
    # no-padding partial-last-block path.
    x2 = jax.random.normal(jax.random.PRNGKey(0), (3, 5, dim), dtype=jnp.float32)
    out2 = jax.block_until_ready(layer_scale(x2, gamma))
    assert jnp.allclose(out2, x2 * gamma, rtol=1e-6, atol=1e-6)

    # dtype promotion matches PyTorch: bf16 x * f32 gamma -> f32 output.
    xb = jax.random.normal(jax.random.PRNGKey(0), (2, 8, dim), dtype=jnp.bfloat16)
    outb = jax.block_until_ready(layer_scale(xb, gamma))
    assert outb.dtype == jnp.float32
    assert jnp.allclose(outb, xb.astype(jnp.float32) * gamma, rtol=1e-6, atol=1e-6)

    print("KERNEL_OK")
</pallas_src>

<mosaic_0001>
module attributes {stable_mosaic.version = 11 : i64} {
  func.func @kernel(%arg0: i32, %arg1: memref<16x128xf32, #tpu.memory_space<vmem>>, %arg2: memref<1x128xf32, #tpu.memory_space<vmem>>, %arg3: memref<16x128xf32, #tpu.memory_space<vmem>>) attributes {dimension_semantics = [#tpu.dimension_semantics<parallel>], iteration_bounds = array<i64: 1>, scalar_prefetch = 0 : i64, scratch_operands = 0 : i64, tpu.core_type = #tpu.core_type<tc>, window_params = [{transform_indices = @transform_0, window_bounds = array<i64: 16, 128>}, {pipeline_mode = #tpu.pipeline_mode<synchronous>, transform_indices = @transform_1, window_bounds = array<i64: 1, 128>}, {transform_indices = @transform_2, window_bounds = array<i64: 16, 128>}]} {
    %c0 = arith.constant 0 : index
    %c0_0 = arith.constant 0 : index
    %0 = vector.load %arg1[%c0, %c0_0] : memref<16x128xf32, #tpu.memory_space<vmem>>, vector<16x128xf32>
    %c0_1 = arith.constant 0 : index
    %c0_2 = arith.constant 0 : index
    %1 = vector.load %arg2[%c0_1, %c0_2] : memref<1x128xf32, #tpu.memory_space<vmem>>, vector<1x128xf32>
    %2 = vector.broadcast %1 : vector<1x128xf32> to vector<16x128xf32>
    %3 = arith.mulf %0, %2 : vector<16x128xf32>
    %c0_3 = arith.constant 0 : index
    %c0_4 = arith.constant 0 : index
    %4 = vector.load %arg3[%c0_3, %c0_4] : memref<16x128xf32, #tpu.memory_space<vmem>>, vector<16x128xf32>
    tpu.vector_store %arg3[%c0_3, %c0_4], %3 {strides = array<i32>} : memref<16x128xf32, #tpu.memory_space<vmem>>, vector<16x128xf32>,
    return
  }
  func.func @transform_0(%arg0: i32) -> (i32, i32) {
    %c0_i32 = arith.constant 0 : i32
    %c0_i32_0 = arith.constant 0 : i32
    return %arg0, %c0_i32 : i32, i32
  }
  func.func @transform_1(%arg0: i32) -> (i32, i32) {
    %c0_i32 = arith.constant 0 : i32
    %c0_i32_0 = arith.constant 0 : i32
    %c0_i32_1 = arith.constant 0 : i32
    return %c0_i32, %c0_i32_0 : i32, i32
  }
  func.func @transform_2(%arg0: i32) -> (i32, i32) {
    %c0_i32 = arith.constant 0 : i32
    %c0_i32_0 = arith.constant 0 : i32
    return %arg0, %c0_i32 : i32, i32
  }
}

</mosaic_0001>

<bundles_post_ra>
// kernel: tpu_custom_call.1
= control target key start
LH: loop header
LB: loop body
LE: loop exit
PB: predicated region body
PF: predicated region fallthrough
CT: control target
= control target key end

     0   :  { %7 = vsyncpa [#allocation3], 0  ;;  %s161_s0 = inlined_call_operand.hbm [shape: f32[16,128], index: 0, kind: input, shape index: {}]   ;;  %s162_s1 = inlined_call_operand.vmem [shape: f32[1,128], index: 1, kind: input, shape index: {}]   ;;  %s163_s2 = inlined_call_operand.hbm [shape: f32[16,128], index: 2, kind: output, shape index: {}]  }
   0x1   :  { %8 = vsyncpa [#allocation4], 0  ;;  %s109_s9 = smov [#allocation2]   ;;  %s61_s13 = scalar_lea.hbm %s161_s0, 256 }
   0x2   :  { %s14_s10 = sshll.u32 %s109_s9, 4  ;;  %p62_p0 = scmp.ne.s32.totalorder %s161_s0, %s61_s13  ;;  %s15_s10 = int_to_ptr.vmem [resolvable:$true] %s14_s10 }
   0x3   :  { %p65_p1 = scmp.lt.u32.totalorder %s61_s13, %s161_s0 }
   0x5   :  { %p67_p2 = pnand %p65_p1, %p62_p0 }
   0x7   :  { %70 = shalt.err (!%p67_p2)
}
   0x8   :  { %s71_s18 = scalar_lea.vmem %s15_s10, 256  ;;  %p76_p4 = scmp.lt.s32.totalorder %s15_s10, %s15_s10 }
   0x9   :  { %p72_p3 = scmp.ne.s32.totalorder %s15_s10, %s71_s18  ;;  %p77_p5 = scmp.lt.s32.totalorder %s71_s18, %s71_s18 }
   0xb   :  { %p78_p6 = por %p77_p5, %p76_p4 }
   0xd   :  { %p79_p7 = pnand %p78_p6, %p72_p3 }
   0xf   :  { %82 = shalt.err (!%p79_p7)
}
  0x10   :  { %s110_s19 = smov 128   ;;  %s111_s20 = smov 8  }
  0x11   :  { %20 = dma.hbm_to_vmem [thread:$0]  %s161_s0, 256, %s15_s10, [#allocation3], %s110_s19, %s110_s19, %s111_s20  }
  0x12   :  { %105 = dma.done.wait [#allocation3], 256  }
  0x13   :  { %106 = vsyncadd [#allocation3], 4294967040  ;;  %s112_s23 = smov [#allocation5]   ;;  %v26_v0 = vld [vmem:[#allocation2] sm:$0xff]  ;;  %v27_v2 = vld [vmem:[#allocation2 + $0x8] sm:$0xff] }
  0x14   :  { %s44_s24 = sshll.u32 %s112_s23, 4  ;;  %v56_v1 = vld [vmem:[%s162_s1] ss:$0 sm:$0xff]  ;;  %s45_s24 = int_to_ptr.vmem [resolvable:$true] %s44_s24 }
  0x15   :  { %v35_v3 = vmul.f32 %v56_v1, %v26_v0  ;;  %v36_v4 = vmul.f32 %v56_v1, %v27_v2  ;;  %s83_s27 = scalar_lea.vmem %s45_s24, 256  ;;  %p88_p9 = scmp.lt.s32.totalorder %s45_s24, %s45_s24 }
  0x16   :  { %p84_p8 = scmp.ne.s32.totalorder %s45_s24, %s83_s27  ;;  %p89_p10 = scmp.lt.s32.totalorder %s83_s27, %s83_s27 }
  0x17   :  { %37 = vst [vmem:[#allocation5] sm:$0xff] %v35_v3  ;;  %38 = vst [vmem:[#allocation5 + $0x8] sm:$0xff] %v36_v4 }
  0x18   :  { %p90_p11 = por %p89_p10, %p88_p9 }
  0x1a   :  { %p91_p12 = pnand %p90_p11, %p84_p8 }
  0x1c   :  { %94 = shalt.err (!%p91_p12)
}
  0x1d   :  { %s95_s29 = scalar_lea.hbm %s163_s2, 256 }
  0x1e   :  { %p96_p13 = scmp.ne.s32.totalorder %s163_s2, %s95_s29  ;;  %p99_p0 = scmp.lt.u32.totalorder %s95_s29, %s163_s2 }
  0x20   :  { %p101_p1 = pnand %p99_p0, %p96_p13 }
  0x22   :  { %104 = shalt.err (!%p101_p1)
}
  0x23   :  { %50 = dma.vmem_to_hbm [thread:$0]  %s45_s24, 256, %s163_s2, [#allocation4], %s110_s19, %s110_s19, %s111_s20  }
  0x24   :  { %107 = dma.done.wait [#allocation4], 256  }
  0x25   :  { %108 = vsyncadd [#allocation4], 4294967040 }
  0x26   :  { %54 = vsyncpa [#allocation3], 1 }
  0x27   :  { %55 = vsyncpa [#allocation4], 1 }

</bundles_post_ra>
